<compile_context>
chip_gen: v7x
topology: tpu7x:2x2x1
jax: 0.10.0
libtpu: 0.0.40
codegen_flags: <defaults>
</compile_context>

<pallas_src>
import jax
import jax.numpy as jnp
from jax import lax
from jax.experimental import pallas as pl
from jax.experimental.pallas import tpu as pltpu

_LANE = 128  # TPU lane width; row tiles are multiples of this.


def _round_up(v, m):
    return ((v + m - 1) // m) * m


def _choose_tile_rows(n_nodes, n_edges, tile_rows):
    """Row tile: multiple of 128, capped so the larger segment gets >=2 tiles when possible."""
    req = max(_LANE, _round_up(int(tile_rows), _LANE))
    max_rows = max(n_nodes, n_edges, 1)
    cap = max(_LANE, _round_up((max_rows + 1) // 2, _LANE))
    return min(req, cap)


def _fused_mlp_kernel(seg_ref, x_ref, w1_ref, b1_ref, w2_ref, b2_ref, w3_ref, b3_ref,
                      w4_ref, b4_ref, o_ref):
    """4-layer MLP on one row tile.

    seg_ref : SMEM per-tile segment ids (consumed only by the index_maps).
    x_ref   : (tr, F) activations in natural layout (rows on sublanes).
    w1..w3  : (H, in) PyTorch-layout weights; b1..b3: (H, 1) f32 biases (broadcast over lanes).
    w4      : (F, H); b4: (1, F) f32 bias (broadcast over rows).
    Layer 1 contracts on F so hidden activations come out lane-dense as (H, tr); layer 4
    contracts on H and emits (tr, F) so the output is stored in natural layout (no wrapper
    transpose). All matmuls accumulate in f32 on the MXU; bias-add/ReLU stay in f32.
    """
    del seg_ref
    w_dtype = w1_ref.dtype
    x = x_ref[...].astype(w_dtype)                               # (tr, F)

    # Layer 1: (H, F) x (tr, F) contracting F -> (H, tr), rows land on the lane axis.
    h = lax.dot_general(w1_ref[...], x, (((1,), (1,)), ((), ())),
                        preferred_element_type=jnp.float32) + b1_ref[...]
    h = jnp.maximum(h, 0.0)

    h = jnp.dot(w2_ref[...], h.astype(w_dtype),
                preferred_element_type=jnp.float32) + b2_ref[...]
    h = jnp.maximum(h, 0.0)

    h = jnp.dot(w3_ref[...], h.astype(w_dtype),
                preferred_element_type=jnp.float32) + b3_ref[...]
    h = jnp.maximum(h, 0.0)

    # Layer 4: (H, tr) x (F, H) contracting H -> (tr, F) natural-layout output.
    out = lax.dot_general(h.astype(w_dtype), w4_ref[...], (((0,), (1,)), ((), ())),
                          preferred_element_type=jnp.float32) + b4_ref[...]
    o_ref[...] = out.astype(o_ref.dtype)


def graph_decoder_pallas(x, edge_attr, node_params, edge_params, *,
                         tile_rows=2048, weight_dtype=None):
    """Run both decoder MLPs (nodes + edges) in one fused Pallas call.

    x: [N, F] node features, edge_attr: [E, F] edge features.
    node_params / edge_params: list of 4 (W (out,in), b (out,)) pairs (PyTorch Linear layout).
    Returns (x_out [N, F], edge_attr_out [E, F]).
    """
    n_nodes, fdim = x.shape
    n_edges, fdim_e = edge_attr.shape
    assert fdim == fdim_e, "node and edge feature dims must match"
    assert x.dtype == edge_attr.dtype, "node and edge features must share a dtype"
    for i in range(4):
        assert node_params[i][0].shape == edge_params[i][0].shape, f"layer {i} weight mismatch"
        assert node_params[i][1].shape == edge_params[i][1].shape, f"layer {i} bias mismatch"
    hdim = node_params[0][0].shape[0]
    dt = x.dtype

    tr = _choose_tile_rows(n_nodes, n_edges, tile_rows)
    rpad_n = _round_up(max(n_nodes, 1), tr)
    rpad_e = _round_up(max(n_edges, 1), tr)
    nt_n, nt_e = rpad_n // tr, rpad_e // tr
    n_tiles = nt_n + nt_e

    # Single pad+concat pass over the activations; natural [rows, F] layout (no transpose).
    # Padded rows produce garbage in the padded output region; it is sliced away below.
    xin = jnp.concatenate([
        jnp.pad(x, ((0, rpad_n - n_nodes), (0, 0))),
        jnp.pad(edge_attr, ((0, rpad_e - n_edges), (0, 0))),
    ], axis=0)                                                   # (rpad_n + rpad_e, F)

    # Per-row-tile segment id (0 = node MLP, 1 = edge MLP), scalar-prefetched into SMEM.
    seg_ids = jnp.concatenate([jnp.zeros((nt_n,), jnp.int32),
                               jnp.ones((nt_e,), jnp.int32)])

    # Stack node/edge parameters along a leading axis of 2; bias layout is layer-dependent:
    # layers 1-3 use (H, 1) columns (broadcast over lanes/rows of the transposed hidden),
    # layer 4 uses (1, F) rows (broadcast over rows of the natural-layout output).
    def stack_layer(i, bias_as_column):
        nw, nb = node_params[i]
        ew, eb = edge_params[i]
        w = jnp.stack([nw, ew], axis=0)
        if weight_dtype is not None:
            w = w.astype(weight_dtype)
        b = jnp.stack([nb, eb], axis=0).astype(jnp.float32)
        b = b[:, :, None] if bias_as_column else b[:, None, :]
        return w, b

    (w1, b1) = stack_layer(0, True)
    (w2, b2) = stack_layer(1, True)
    (w3, b3) = stack_layer(2, True)
    (w4, b4) = stack_layer(3, False)

    def pspec(shape):
        # Weight / bias block: leading segment axis squeezed, selected via the prefetched ids.
        return pl.BlockSpec((None,) + shape, lambda j, seg: (seg[j], 0, 0))

    out = pl.pallas_call(
        _fused_mlp_kernel,
        out_shape=jax.ShapeDtypeStruct((rpad_n + rpad_e, fdim), dt),
        grid_spec=pltpu.PrefetchScalarGridSpec(
            num_scalar_prefetch=1,
            grid=(n_tiles,),                                     # 1-D grid over row tiles
            in_specs=[
                pl.BlockSpec((tr, fdim), lambda j, seg: (j, 0)),  # activations
                pspec((hdim, fdim)), pspec((hdim, 1)),
                pspec((hdim, hdim)), pspec((hdim, 1)),
                pspec((hdim, hdim)), pspec((hdim, 1)),
                pspec((fdim, hdim)), pspec((1, fdim)),
            ],
            out_specs=pl.BlockSpec((tr, fdim), lambda j, seg: (j, 0)),
        ),
        compiler_params=pltpu.CompilerParams(
            dimension_semantics=("parallel",)),                  # row-tile axis core-sharded on v7x
    )(seg_ids, xin, w1, b1, w2, b2, w3, b3, w4, b4)

    x_out = out[:n_nodes]
    edge_out = out[rpad_n:rpad_n + n_edges]
    return x_out, edge_out


def init_mlp_params(key, feature_dim, hidden_dim, dtype=jnp.float32):
    """Synthetic params in PyTorch Linear layout: W (out_features, in_features), b (out,)."""
    dims = [(feature_dim, hidden_dim), (hidden_dim, hidden_dim),
            (hidden_dim, hidden_dim), (hidden_dim, feature_dim)]
    params = []
    for (din, dout) in dims:
        key, kw, kb = jax.random.split(key, 3)
        bound = float(1.0 / (din ** 0.5))
        w = jax.random.uniform(kw, (dout, din), dtype, -bound, bound)
        b = jax.random.uniform(kb, (dout,), dtype, -bound, bound)
        params.append((w, b))
    return params


class GraphDecoderPallas:
    """JAX/Pallas equivalent of GraphDecoder (MetaLayer(EdgeDecoderModel, NodeDecoderModel))."""

    def __init__(self, feature_dim, hidden_dim, key, tile_rows=2048, weight_dtype=None):
        k_edge, k_node = jax.random.split(key)
        self.edge_params = init_mlp_params(k_edge, feature_dim, hidden_dim)
        self.node_params = init_mlp_params(k_node, feature_dim, hidden_dim)
        self.tile_rows = tile_rows
        self.weight_dtype = weight_dtype

    def __call__(self, x, edge_index, edge_attr, u=None, batch=None):
        # MetaLayer: edge model then node model; global model is None. Both MLPs run in one
        # fused pallas_call (edge_index / u / batch are unused by the reference model).
        x_out, edge_attr_out = graph_decoder_pallas(
            x, edge_attr, self.node_params, self.edge_params,
            tile_rows=self.tile_rows, weight_dtype=self.weight_dtype)
        return x_out, edge_attr_out, None


def _mlp_ref(rows, params):
    h = rows
    for i, (w, b) in enumerate(params):
        h = h @ w.T + b
        if i < len(params) - 1:
            h = jnp.maximum(h, 0.0)
    return h


if __name__ == "__main__":
    feature_dim = 16
    hidden_dim = 32
    num_nodes = 8
    num_edges = 16

    key = jax.random.PRNGKey(0)
    k_model, kx, ke, ki = jax.random.split(key, 4)

    x = jax.random.normal(kx, (num_nodes, feature_dim), jnp.float32)
    edge_attr = jax.random.normal(ke, (num_edges, feature_dim), jnp.float32)
    edge_index = jax.random.randint(ki, (2, num_edges), 0, num_nodes, jnp.int32)

    model = GraphDecoderPallas(feature_dim, hidden_dim, k_model)

    x_out, edge_out, u_out = model(x, edge_index, edge_attr)
    jax.block_until_ready((x_out, edge_out))

    # Correctness check against a plain-JAX reference of the same math (f32 weights).
    x_ref = _mlp_ref(x, model.node_params)
    e_ref = _mlp_ref(edge_attr, model.edge_params)
    assert x_out.shape == (num_nodes, feature_dim)
    assert edge_out.shape == (num_edges, feature_dim)
    assert u_out is None
    assert jnp.allclose(x_out, x_ref, atol=1e-4, rtol=1e-4)
    assert jnp.allclose(edge_out, e_ref, atol=1e-4, rtol=1e-4)

    # bf16-weight path (native MXU dtype, halves weight DMA); loose tolerance vs f32 reference
    # because intermediates are downcast between layers.
    x_out_bf, edge_out_bf = graph_decoder_pallas(
        x, edge_attr, model.node_params, model.edge_params,
        tile_rows=model.tile_rows, weight_dtype=jnp.bfloat16)
    jax.block_until_ready((x_out_bf, edge_out_bf))
    assert jnp.allclose(x_out_bf, x_ref, atol=1e-1, rtol=1e-1)
    assert jnp.allclose(edge_out_bf, e_ref, atol=1e-1, rtol=1e-1)

    print("KERNEL_OK")
</pallas_src>

<mosaic_0001>
module attributes {stable_mosaic.version = 11 : i64} {
  func.func @_fused_mlp_kernel(%arg0: i32, %arg1: memref<2xi32, #tpu.memory_space<smem>>, %arg2: memref<128x16xf32, #tpu.memory_space<vmem>>, %arg3: memref<1x32x16xf32, #tpu.memory_space<vmem>>, %arg4: memref<1x32x1xf32, #tpu.memory_space<vmem>>, %arg5: memref<1x32x32xf32, #tpu.memory_space<vmem>>, %arg6: memref<1x32x1xf32, #tpu.memory_space<vmem>>, %arg7: memref<1x32x32xf32, #tpu.memory_space<vmem>>, %arg8: memref<1x32x1xf32, #tpu.memory_space<vmem>>, %arg9: memref<1x16x32xf32, #tpu.memory_space<vmem>>, %arg10: memref<1x1x16xf32, #tpu.memory_space<vmem>>, %arg11: memref<128x16xf32, #tpu.memory_space<vmem>>) attributes {dimension_semantics = [#tpu.dimension_semantics<parallel>], iteration_bounds = array<i64: 2>, scalar_prefetch = 1 : i64, scratch_operands = 0 : i64, tpu.core_type = #tpu.core_type<tc>, window_params = [{transform_indices = @transform_0, window_bounds = array<i64: 128, 16>}, {transform_indices = @transform_1, window_bounds = array<i64: 1, 32, 16>}, {transform_indices = @transform_2, window_bounds = array<i64: 1, 32, 1>}, {transform_indices = @transform_3, window_bounds = array<i64: 1, 32, 32>}, {transform_indices = @transform_4, window_bounds = array<i64: 1, 32, 1>}, {transform_indices = @transform_5, window_bounds = array<i64: 1, 32, 32>}, {transform_indices = @transform_6, window_bounds = array<i64: 1, 32, 1>}, {transform_indices = @transform_7, window_bounds = array<i64: 1, 16, 32>}, {transform_indices = @transform_8, window_bounds = array<i64: 1, 1, 16>}, {transform_indices = @transform_9, window_bounds = array<i64: 128, 16>}]} {
    %c0 = arith.constant 0 : index
    %c0_0 = arith.constant 0 : index
    %0 = vector.load %arg2[%c0, %c0_0] : memref<128x16xf32, #tpu.memory_space<vmem>>, vector<128x16xf32>
    %c0_1 = arith.constant 0 : index
    %c0_2 = arith.constant 0 : index
    %c0_3 = arith.constant 0 : index
    %1 = vector.load %arg3[%c0_1, %c0_2, %c0_3] : memref<1x32x16xf32, #tpu.memory_space<vmem>>, vector<1x32x16xf32>
    %2 = vector.shape_cast %1 : vector<1x32x16xf32> to vector<32x16xf32>
    %cst = arith.constant dense<0.000000e+00> : vector<32x128xf32>
    %3 = tpu.matmul %2, %0, %cst {dimension_numbers = #tpu.dot_dimension_numbers<[1], [1], [0], [0], [0, 0, 1, 0], [], []>} : vector<32x16xf32>, vector<128x16xf32>, vector<32x128xf32> -> vector<32x128xf32>
    %c0_4 = arith.constant 0 : index
    %c0_5 = arith.constant 0 : index
    %c0_6 = arith.constant 0 : index
    %4 = vector.load %arg4[%c0_4, %c0_5, %c0_6] : memref<1x32x1xf32, #tpu.memory_space<vmem>>, vector<1x32x1xf32>
    %5 = vector.shape_cast %4 : vector<1x32x1xf32> to vector<32x1xf32>
    %6 = vector.broadcast %5 : vector<32x1xf32> to vector<32x128xf32>
    %7 = arith.addf %3, %6 : vector<32x128xf32>
    %cst_7 = arith.constant 0.000000e+00 : f32
    %8 = vector.broadcast %cst_7 : f32 to vector<32x128xf32>
    %9 = arith.maximumf %7, %8 : vector<32x128xf32>
    %c0_8 = arith.constant 0 : index
    %c0_9 = arith.constant 0 : index
    %c0_10 = arith.constant 0 : index
    %10 = vector.load %arg5[%c0_8, %c0_9, %c0_10] : memref<1x32x32xf32, #tpu.memory_space<vmem>>, vector<1x32x32xf32>
    %11 = vector.shape_cast %10 : vector<1x32x32xf32> to vector<32x32xf32>
    %cst_11 = arith.constant dense<0.000000e+00> : vector<32x128xf32>
    %12 = tpu.matmul %11, %9, %cst_11 {dimension_numbers = #tpu.dot_dimension_numbers<[1], [0], [0], [1], [0, 0, 1, 1], [], []>} : vector<32x32xf32>, vector<32x128xf32>, vector<32x128xf32> -> vector<32x128xf32>
    %c0_12 = arith.constant 0 : index
    %c0_13 = arith.constant 0 : index
    %c0_14 = arith.constant 0 : index
    %13 = vector.load %arg6[%c0_12, %c0_13, %c0_14] : memref<1x32x1xf32, #tpu.memory_space<vmem>>, vector<1x32x1xf32>
    %14 = vector.shape_cast %13 : vector<1x32x1xf32> to vector<32x1xf32>
    %15 = vector.broadcast %14 : vector<32x1xf32> to vector<32x128xf32>
    %16 = arith.addf %12, %15 : vector<32x128xf32>
    %cst_15 = arith.constant 0.000000e+00 : f32
    %17 = vector.broadcast %cst_15 : f32 to vector<32x128xf32>
    %18 = arith.maximumf %16, %17 : vector<32x128xf32>
    %c0_16 = arith.constant 0 : index
    %c0_17 = arith.constant 0 : index
    %c0_18 = arith.constant 0 : index
    %19 = vector.load %arg7[%c0_16, %c0_17, %c0_18] : memref<1x32x32xf32, #tpu.memory_space<vmem>>, vector<1x32x32xf32>
    %20 = vector.shape_cast %19 : vector<1x32x32xf32> to vector<32x32xf32>
    %cst_19 = arith.constant dense<0.000000e+00> : vector<32x128xf32>
    %21 = tpu.matmul %20, %18, %cst_19 {dimension_numbers = #tpu.dot_dimension_numbers<[1], [0], [0], [1], [0, 0, 1, 1], [], []>} : vector<32x32xf32>, vector<32x128xf32>, vector<32x128xf32> -> vector<32x128xf32>
    %c0_20 = arith.constant 0 : index
    %c0_21 = arith.constant 0 : index
    %c0_22 = arith.constant 0 : index
    %22 = vector.load %arg8[%c0_20, %c0_21, %c0_22] : memref<1x32x1xf32, #tpu.memory_space<vmem>>, vector<1x32x1xf32>
    %23 = vector.shape_cast %22 : vector<1x32x1xf32> to vector<32x1xf32>
    %24 = vector.broadcast %23 : vector<32x1xf32> to vector<32x128xf32>
    %25 = arith.addf %21, %24 : vector<32x128xf32>
    %cst_23 = arith.constant 0.000000e+00 : f32
    %26 = vector.broadcast %cst_23 : f32 to vector<32x128xf32>
    %27 = arith.maximumf %25, %26 : vector<32x128xf32>
    %c0_24 = arith.constant 0 : index
    %c0_25 = arith.constant 0 : index
    %c0_26 = arith.constant 0 : index
    %28 = vector.load %arg9[%c0_24, %c0_25, %c0_26] : memref<1x16x32xf32, #tpu.memory_space<vmem>>, vector<1x16x32xf32>
    %29 = vector.shape_cast %28 : vector<1x16x32xf32> to vector<16x32xf32>
    %cst_27 = arith.constant dense<0.000000e+00> : vector<128x16xf32>
    %30 = tpu.matmul %27, %29, %cst_27 {dimension_numbers = #tpu.dot_dimension_numbers<[0], [1], [1], [0], [0, 1, 1, 0], [], []>} : vector<32x128xf32>, vector<16x32xf32>, vector<128x16xf32> -> vector<128x16xf32>
    %c0_28 = arith.constant 0 : index
    %c0_29 = arith.constant 0 : index
    %c0_30 = arith.constant 0 : index
    %31 = vector.load %arg10[%c0_28, %c0_29, %c0_30] : memref<1x1x16xf32, #tpu.memory_space<vmem>>, vector<1x1x16xf32>
    %32 = vector.shape_cast %31 : vector<1x1x16xf32> to vector<1x16xf32>
    %33 = vector.broadcast %32 : vector<1x16xf32> to vector<128x16xf32>
    %34 = arith.addf %30, %33 : vector<128x16xf32>
    %c0_31 = arith.constant 0 : index
    %c0_32 = arith.constant 0 : index
    %35 = vector.load %arg11[%c0_31, %c0_32] : memref<128x16xf32, #tpu.memory_space<vmem>>, vector<128x16xf32>
    tpu.vector_store %arg11[%c0_31, %c0_32], %34 {strides = array<i32>} : memref<128x16xf32, #tpu.memory_space<vmem>>, vector<128x16xf32>,
    return
  }
  func.func @transform_0(%arg0: i32, %arg1: memref<2xi32, #tpu.memory_space<smem>>) -> (i32, i32) {
    %c0_i32 = arith.constant 0 : i32
    %c0_i32_0 = arith.constant 0 : i32
    return %arg0, %c0_i32 : i32, i32
  }
  func.func @transform_1(%arg0: i32, %arg1: memref<2xi32, #tpu.memory_space<smem>>) -> (i32, i32, i32) {
    %0 = arith.index_cast %arg0 : i32 to index
    %1 = memref.load %arg1[%0] : memref<2xi32, #tpu.memory_space<smem>>
    %c0_i32 = arith.constant 0 : i32
    %c0_i32_0 = arith.constant 0 : i32
    %c0_i32_1 = arith.constant 0 : i32
    return %1, %c0_i32, %c0_i32_0 : i32, i32, i32
  }
  func.func @transform_2(%arg0: i32, %arg1: memref<2xi32, #tpu.memory_space<smem>>) -> (i32, i32, i32) {
    %0 = arith.index_cast %arg0 : i32 to index
    %1 = memref.load %arg1[%0] : memref<2xi32, #tpu.memory_space<smem>>
    %c0_i32 = arith.constant 0 : i32
    %c0_i32_0 = arith.constant 0 : i32
    %c0_i32_1 = arith.constant 0 : i32
    return %1, %c0_i32, %c0_i32_0 : i32, i32, i32
  }
  func.func @transform_3(%arg0: i32, %arg1: memref<2xi32, #tpu.memory_space<smem>>) -> (i32, i32, i32) {
    %0 = arith.index_cast %arg0 : i32 to index
    %1 = memref.load %arg1[%0] : memref<2xi32, #tpu.memory_space<smem>>
    %c0_i32 = arith.constant 0 : i32
    %c0_i32_0 = arith.constant 0 : i32
    %c0_i32_1 = arith.constant 0 : i32
    return %1, %c0_i32, %c0_i32_0 : i32, i32, i32
  }
  func.func @transform_4(%arg0: i32, %arg1: memref<2xi32, #tpu.memory_space<smem>>) -> (i32, i32, i32) {
    %0 = arith.index_cast %arg0 : i32 to index
    %1 = memref.load %arg1[%0] : memref<2xi32, #tpu.memory_space<smem>>
    %c0_i32 = arith.constant 0 : i32
    %c0_i32_0 = arith.constant 0 : i32
    %c0_i32_1 = arith.constant 0 : i32
    return %1, %c0_i32, %c0_i32_0 : i32, i32, i32
  }
  func.func @transform_5(%arg0: i32, %arg1: memref<2xi32, #tpu.memory_space<smem>>) -> (i32, i32, i32) {
    %0 = arith.index_cast %arg0 : i32 to index
    %1 = memref.load %arg1[%0] : memref<2xi32, #tpu.memory_space<smem>>
    %c0_i32 = arith.constant 0 : i32
    %c0_i32_0 = arith.constant 0 : i32
    %c0_i32_1 = arith.constant 0 : i32
    return %1, %c0_i32, %c0_i32_0 : i32, i32, i32
  }
  func.func @transform_6(%arg0: i32, %arg1: memref<2xi32, #tpu.memory_space<smem>>) -> (i32, i32, i32) {
    %0 = arith.index_cast %arg0 : i32 to index
    %1 = memref.load %arg1[%0] : memref<2xi32, #tpu.memory_space<smem>>
    %c0_i32 = arith.constant 0 : i32
    %c0_i32_0 = arith.constant 0 : i32
    %c0_i32_1 = arith.constant 0 : i32
    return %1, %c0_i32, %c0_i32_0 : i32, i32, i32
  }
  func.func @transform_7(%arg0: i32, %arg1: memref<2xi32, #tpu.memory_space<smem>>) -> (i32, i32, i32) {
    %0 = arith.index_cast %arg0 : i32 to index
    %1 = memref.load %arg1[%0] : memref<2xi32, #tpu.memory_space<smem>>
    %c0_i32 = arith.constant 0 : i32
    %c0_i32_0 = arith.constant 0 : i32
    %c0_i32_1 = arith.constant 0 : i32
    return %1, %c0_i32, %c0_i32_0 : i32, i32, i32
  }
  func.func @transform_8(%arg0: i32, %arg1: memref<2xi32, #tpu.memory_space<smem>>) -> (i32, i32, i32) {
    %0 = arith.index_cast %arg0 : i32 to index
    %1 = memref.load %arg1[%0] : memref<2xi32, #tpu.memory_space<smem>>
    %c0_i32 = arith.constant 0 : i32
    %c0_i32_0 = arith.constant 0 : i32
    %c0_i32_1 = arith.constant 0 : i32
    return %1, %c0_i32, %c0_i32_0 : i32, i32, i32
  }
  func.func @transform_9(%arg0: i32, %arg1: memref<2xi32, #tpu.memory_space<smem>>) -> (i32, i32) {
    %c0_i32 = arith.constant 0 : i32
    %c0_i32_0 = arith.constant 0 : i32
    return %arg0, %c0_i32 : i32, i32
  }
}

</mosaic_0001>

<bundles_post_ra>
// kernel: tpu_custom_call.1
= control target key start
LH: loop header
LB: loop body
LE: loop exit
PB: predicated region body
PF: predicated region fallthrough
CT: control target
= control target key end

     0   :  { %s1998_s0 = inlined_call_operand.vmem [shape: s32[2], index: 0, kind: input, shape index: {}]   ;;  %s1999_s1 = inlined_call_operand.vmem [shape: f32[256,16], index: 1, kind: input, shape index: {}]   ;;  %s2000_s2 = inlined_call_operand.vmem [shape: f32[2,32,16], index: 2, kind: input, shape index: {}]   ;;  %s2001_s3 = inlined_call_operand.vmem [shape: f32[2,32,1], index: 3, kind: input, shape index: {}]   ;;  %s2002_s4 = inlined_call_operand.vmem [shape: f32[2,32,32], index: 4, kind: input, shape index: {}]   ;;  %s2003_s5 = inlined_call_operand.vmem [shape: f32[2,32,1], index: 5, kind: input, shape index: {}]   ;;  %s2004_s6 = inlined_call_operand.vmem [shape: f32[2,32,32], index: 6, kind: input, shape index: {}]   ;;  %s2005_s7 = inlined_call_operand.vmem [shape: f32[2,32,1], index: 7, kind: input, shape index: {}]   ;;  %s2006_s8 = inlined_call_operand.vmem [shape: f32[2,16,32], index: 8, kind: input, shape index: {}]   ;;  %s2007_s9 = inlined_call_operand.vmem [shape: f32[2,1,16], index: 9, kind: input, shape index: {}]   ;;  %s2008_s10 = inlined_call_operand.vmem [shape: f32[256,16], index: 10, kind: output, shape index: {}]  }
   0x1   :  { %s15_s15 = sshll.u32 %s1998_s0, 4  ;;  %s16_s15 = int_to_ptr.vmem [resolvable:$true] %s15_s15 }
   0x2   :  { %s1721_s16 = scalar_lea.vmem %s16_s15, 16  ;;  %p1726_p1 = scmp.lt.s32.totalorder %s16_s15, %s16_s15 }
   0x3   :  { %p1722_p0 = scmp.ne.s32.totalorder %s16_s15, %s1721_s16  ;;  %p1727_p2 = scmp.lt.s32.totalorder %s1721_s16, %s1721_s16 }
   0x5   :  { %p1728_p3 = por %p1727_p2, %p1726_p1 }
   0x7   :  { %p1729_p4 = pnand %p1728_p3, %p1722_p0 }
   0x9   :  { %1732 = shalt.err (!%p1729_p4)  }
   0xa   :  { %s1743_s17 = smov [#allocation3]  }
   0xb   :  { %18 = dma.vmem_to_smem %s16_s15, 16, %s1743_s17, [#allocation2] }
   0xc   :  { %1737 = dma.done.wait [#allocation2], 16 }
   0xd   :  { %1738 = vsyncadd [#allocation2], 4294967280 }
   0xe   :  { %20 = sfence }
   0xf   :  { %s1803_s18 = smov 0  }
  0x10 LB: > { %s1809_s0 = sadd.s32 4294967295, %s1741_s18   ;;  %p1415_p5 = scmp.ge.s32.totalorder %s1741_s18, 1  ;;  %s1741_s18 = sphi %s1803_s18, %s26_s18  }
  0x11   : > { %p405_p6 = scmp.lt.s32.totalorder %s1741_s18, 3 }
  0x13   : > { %p406_p7 = pnand %p1415_p5, %p405_p6 }
  0x14   : > { %s1416_s19 = sshll.u32 (!%p406_p7), %s1809_s0, 4  ;;  %s493_s20 = sld [smem:[#allocation3 + %s1809_s0]] (!%p406_p7)  ;;  %v1744_v0 = vmov (!%p406_p7), 0   ;;  %vm597_vm0 = vcmask (!%p406_p7), 130048   ;;  %vm775_vm2 = vcmask (!%p406_p7), 261120  }
  0x15   : > { %409 = sbr.rel (%p406_p7) target bundleno = 1174 (0x496), region = 56  ;;  %p488_p8 = scmp.lt.s32.totalorder (!%p406_p7), %s1416_s19, 31  ;;  %1719 = vset.pattern.permute.xlu0 (!%p406_p7), %v1744_v0  ;;  %1720 = vset.pattern.permute.xlu1 (!%p406_p7), %v1744_v0  ;;  %vm1834_vm1 = vmpackc.low (!%p406_p7), %vm597_vm0, %vm597_vm0 }
  0x16   : > { %s500_s21 = sld [smem:[#allocation3 + %s1809_s0]] (!%p406_p7)  ;;  %vm1703_vm3 = vmpackc.low (!%p406_p7), %vm775_vm2, %vm775_vm2 }
  0x17   : > { %s1817_s22 = sld [smem:[#allocation3 + %s1809_s0]] (!%p406_p7) }
  0x18   : > { %s1823_s24 = sld [smem:[#allocation3 + %s1809_s0]] (!%p406_p7) }
  0x19   : > { %s535_s17 = sld [smem:[#allocation3 + %s1809_s0]] (!%p406_p7) }
  0x1a   : > { %p494_p9 = scmp.lt.s32.totalorder (!%p406_p7), %s493_s20, 1  ;;  %s542_s26 = sld [smem:[#allocation3 + %s1809_s0]] (!%p406_p7) }
  0x1c   : > { %s2012_s19 = smov (!%p488_p8, %s1416_s19), 31  ;;  %p501_p10 = scmp.lt.s32.totalorder %s500_s21, 1 }
  0x1d   : > { %s1417_s23 = sshll.u32 %s2012_s19, 3  ;;  %p515_p11 = scmp.lt.s32.totalorder %s1817_s22, 1 }
  0x1e   : > { %s1830_s27 = scalar_lea.vmem %s1999_s1, %s1417_s23  ;;  %s2014_s20 = smov (!%p494_p9, %s493_s20), 1 }
  0x1f   : > { %v553_v2 = vld [vmem:[%s1830_s27] sm:$0xff]  ;;  %v554_v3 = vld [vmem:[%s1830_s27 + $0x8] sm:$0xff]  ;;  %v555_v4 = vld [vmem:[%s1830_s27 + $0x10] sm:$0xff]  ;;  %s2016_s21 = smov (!%p501_p10, %s500_s21), 1  ;;  %s1483_s28 = sshll.u32 %s2014_s20, 5 }
  0x20   : > { %v1638_v5 = vpack.c.bf16 %v554_v3, %v553_v2  ;;  %v556_v6 = vld [vmem:[%s1830_s27 + $0x18] sm:$0xff]  ;;  %s1852_s11 = scalar_lea.vmem %s2000_s2, %s1483_s28  ;;  %s1484_s12 = sshll.u32 %s2016_s21, 5  ;;  %v557_v8 = vld [vmem:[%s1830_s27 + $0x20] sm:$0xff]  ;;  %v558_v9 = vld [vmem:[%s1830_s27 + $0x28] sm:$0xff] }
  0x21   : > { %v1644_v7 = vpack.c.bf16 %v556_v6, %v555_v4  ;;  %v569_v10 = vld [vmem:[%s1852_s11] sm:$0xff]  ;;  %s505_s15 = scalar_lea.vmem %s2001_s3, %s1484_s12  ;;  %p529_p12 = scmp.lt.s32.totalorder %s1823_s24, 1  ;;  %v1650_v13 = vpack.c.bf16 %v558_v9, %v557_v8  ;;  %v559_v17 = vld [vmem:[%s1830_s27 + $0x30] sm:$0xff]  ;;  %v560_v18 = vld [vmem:[%s1830_s27 + $0x38] sm:$0xff] }
  0x22   : > { %1640 = vmatprep.subr.msk.bf16.mxu0 %vm1834_vm1, %v1638_v5  ;;  %1576 = vmatprep.mubr.msk.f32.mxu0 %vm597_vm0, %v569_v10  ;;  %v573_v11 = vld [vmem:[%s505_s15] sm:$0xff]  ;;  %v575_v12 = vld [vmem:[%s505_s15 + $0x10] sm:$0xff]  ;;  %s2018_s22 = smov (!%p515_p11, %s1817_s22), 1  ;;  %v574_v14 = vld [vmem:[%s505_s15 + $0x8] sm:$0xff]  ;;  %v1656_v20 = vpack.c.bf16 %v560_v18, %v559_v17  ;;  %p536_p1 = scmp.lt.s32.totalorder %s535_s17, 1 }
  0x23   : > { %1643 = vmatpush3.bf16.xpose.msk.msra.mxu0 %vm1834_vm1, %v1638_v5  ;;  %579 = vperm.xlu0 %1719, %v573_v11   ;;  %s1486_s16 = sshll.u32 %s2018_s22, 5  ;;  %v576_v15 = vld [vmem:[%s505_s15 + $0x18] sm:$0xff]  ;;  %s2020_s24 = smov (!%p529_p12, %s1823_s24), 1  ;;  %v561_v24 = vld [vmem:[%s1830_s27 + $0x40] sm:$0xff]  ;;  %v562_v25 = vld [vmem:[%s1830_s27 + $0x48] sm:$0xff] }
  0x24   : > { %1646 = vmatprep.subr.msk.bf16.mxu0 %vm1834_vm1, %v1644_v7  ;;  %589 = vperm.xlu1 %1720, %v575_v12   ;;  %s519_s21 = scalar_lea.vmem %s2003_s5, %s1486_s16  ;;  %s1488_s22 = sshll.u32 %s2020_s24, 5  ;;  %v1662_v27 = vpack.c.bf16 %v562_v25, %v561_v24  ;;  %v563_v30 = vld [vmem:[%s1830_s27 + $0x50] sm:$0xff]  ;;  %v564_v31 = vld [vmem:[%s1830_s27 + $0x58] sm:$0xff]  ;;  %v565_v33 = vld [vmem:[%s1830_s27 + $0x60] sm:$0xff] }
  0x25   : > { %v751_v16 = vld [vmem:[%s519_s21] sm:$0xff]  ;;  %v752_v19 = vld [vmem:[%s519_s21 + $0x8] sm:$0xff]  ;;  %v753_v21 = vld [vmem:[%s519_s21 + $0x10] sm:$0xff]  ;;  %s533_s28 = scalar_lea.vmem %s2005_s7, %s1488_s22  ;;  %v1668_v32 = vpack.c.bf16 %v564_v31, %v563_v30  ;;  %s507_s24 = sld [smem:[#allocation3 + %s1809_s0]] }
  0x26   : > { %v754_v22 = vld [vmem:[%s519_s21 + $0x18] sm:$0xff]  ;;  %v881_v23 = vld [vmem:[%s533_s28] sm:$0xff]  ;;  %v882_v26 = vld [vmem:[%s533_s28 + $0x8] sm:$0xff]  ;;  %s2026_s17 = smov (!%p536_p1, %s535_s17), 1  ;;  %p543_p2 = scmp.lt.s32.totalorder %s542_s26, 1 }
  0x27   : > { %584 = vperm.xlu0 %1719, %v574_v14   ;;  %v883_v28 = vld [vmem:[%s533_s28 + $0x10] sm:$0xff]  ;;  %v884_v29 = vld [vmem:[%s533_s28 + $0x18] sm:$0xff]  ;;  %v566_v34 = vld [vmem:[%s1830_s27 + $0x68] sm:$0xff]  ;;  %s1489_s20 = sshll.u32 %s2026_s17, 4 }
  0x28   : > { %594 = vperm.xlu1 %1720, %v576_v15   ;;  %v1674_v35 = vpack.c.bf16 %v566_v34, %v565_v33  ;;  %v567_v36 = vld [vmem:[%s1830_s27 + $0x70] sm:$0xff]  ;;  %v568_v37 = vld [vmem:[%s1830_s27 + $0x78] sm:$0xff]  ;;  %v570_v39 = vld [vmem:[%s1852_s11 + $0x8] sm:$0xff]  ;;  %s540_s25 = scalar_lea.vmem %s2006_s8, %s1489_s20  ;;  %s2028_s26 = smov (!%p543_p2, %s542_s26), 1 }
  0x29   : > { %v1680_v38 = vpack.c.bf16 %v568_v37, %v567_v36  ;;  %v571_v40 = vld [vmem:[%s1852_s11 + $0x10] sm:$0xff]  ;;  %v572_v41 = vld [vmem:[%s1852_s11 + $0x18] sm:$0xff]  ;;  %s521_s11 = sld [smem:[#allocation3 + %s1809_s0]] }
  0x2b   : > { %1649 = vmatpush3.bf16.xpose.msk.msra.mxu0 %vm1834_vm1, %v1644_v7  ;;  %757 = vperm.xlu0 %1719, %v751_v16   ;;  %p508_p13 = scmp.lt.s32.totalorder %s507_s24, 1 }
  0x2c   : > { %1652 = vmatprep.subr.msk.bf16.mxu0 %vm1834_vm1, %v1650_v13  ;;  %762 = vperm.xlu1 %1720, %v752_v19  }
  0x2d   : > { %s2022_s24 = smov (!%p508_p13, %s507_s24), 1 }
  0x2e   : > { %s1485_s27 = sshll.u32 %s2022_s24, 5 }
  0x2f   : > { %767 = vperm.xlu0 %1719, %v753_v21   ;;  %s512_s12 = scalar_lea.vmem %s2002_s4, %s1485_s27  ;;  %p522_p0 = scmp.lt.s32.totalorder %s521_s11, 1 }
  0x30   : > { %772 = vperm.xlu1 %1720, %v754_v22   ;;  %v747_v42 = vld [vmem:[%s512_s12] sm:$0xff]  ;;  %v748_v61 = vld [vmem:[%s512_s12 + $0x8] sm:$0xff]  ;;  %v749_v62 = vld [vmem:[%s512_s12 + $0x10] sm:$0xff]  ;;  %s545_s27 = scalar_lea.vmem %s2007_s9, %s2028_s26 }
  0x31   : > { %1590 = vmatprep.mubr.msk.f32.mxu1 %vm775_vm2, %v747_v42  ;;  %v750_v63 = vld [vmem:[%s512_s12 + $0x18] sm:$0xff]  ;;  %s2024_s11 = smov (!%p522_p0, %s521_s11), 1  ;;  %v1006_v22 = vld [vmem:[%s540_s25] sm:$0xff]  ;;  %s1961_s12 = scalar_lea.vmem %s2008_s10, %s1417_s23 }
  0x32   : > { %s1487_s13 = sshll.u32 %s2024_s11, 5 }
  0x33   : > { %1655 = vmatpush3.bf16.xpose.msk.msra.mxu0 %vm1834_vm1, %v1650_v13  ;;  %887 = vperm.xlu0 %1719, %v881_v23   ;;  %s526_s16 = scalar_lea.vmem %s2004_s6, %s1487_s13  ;;  %v1007_v23 = vld [vmem:[%s540_s25 + $0x8] sm:$0xff] }
  0x34   : > { %1658 = vmatprep.subr.msk.bf16.mxu0 %vm1834_vm1, %v1656_v20  ;;  %892 = vperm.xlu1 %1720, %v882_v26   ;;  %v877_v0 = vld [vmem:[%s526_s16] sm:$0xff]  ;;  %v878_v19 = vld [vmem:[%s526_s16 + $0x8] sm:$0xff]  ;;  %v880_v21 = vld [vmem:[%s526_s16 + $0x18] sm:$0xff]  ;;  %v1702_v24 = vpack.c.bf16 %v1007_v23, %v1006_v22 }
  0x37   : > { %897 = vperm.xlu0 %1719, %v883_v28  }
  0x38   : > { %902 = vperm.xlu1 %1720, %v884_v29  }
  0x3b   : > { %1661 = vmatpush3.bf16.xpose.msk.msra.mxu0 %vm1834_vm1, %v1656_v20  ;;  %v879_v20 = vld [vmem:[%s526_s16 + $0x10] sm:$0xff] }
  0x3c   : > { %1664 = vmatprep.subr.msk.bf16.mxu0 %vm1834_vm1, %v1662_v27 }
  0x43   : > { %1667 = vmatpush3.bf16.xpose.msk.msra.mxu0 %vm1834_vm1, %v1662_v27 }
  0x44   : > { %1670 = vmatprep.subr.msk.bf16.mxu0 %vm1834_vm1, %v1668_v32 }
  0x4b   : > { %1673 = vmatpush3.bf16.xpose.msk.msra.mxu0 %vm1834_vm1, %v1668_v32 }
  0x4c   : > { %1676 = vmatprep.subr.msk.bf16.mxu0 %vm1834_vm1, %v1674_v35 }
  0x53   : > { %1679 = vmatpush3.bf16.xpose.msk.msra.mxu0 %vm1834_vm1, %v1674_v35 }
  0x54   : > { %1682 = vmatprep.subr.msk.bf16.mxu0 %vm1834_vm1, %v1680_v38 }
  0x5b   : > { %1685 = vmatpush3.bf16.xpose.msk.msra.mxu0 %vm1834_vm1, %v1680_v38 }
  0x62   : > { %1577 = vmatmul.mubr.msk.f32.vlgmr.msra.gmra.mrb[0].mxu0 %vm597_vm0, %v570_v39 }
  0x63   : > { %1579 = vmatprep.mubr.msk.f32.mxu0 %vm597_vm0, %v571_v40 }
  0x66   : > { %1580 = vmatmul.mubr.msk.f32.gmra.mrb[2].mxu0 %vm597_vm0, %v572_v41 }
  0xa2   : > { %v580_v43 = vpop.permute.xlu0 %579 }
  0xa3   : > { %v590_v44 = vpop.permute.xlu1 %589 }
  0xa6   : > { %v585_v45 = vpop.permute.xlu0 %584 }
  0xa7   : > { %v595_v51 = vpop.permute.xlu1 %594 }
  0xaa   : > { %v758_v2 = vpop.permute.xlu0 %757 }
  0xab   : > { %v763_v1 = vpop.permute.xlu1 %762 }
  0xae   : > { %v768_v11 = vpop.permute.xlu0 %767 }
  0xaf   : > { %v773_v8 = vpop.permute.xlu1 %772 }
  0xb2   : > { %v888_v26 = vpop.permute.xlu0 %887 }
  0xb3   : > { %v893_v29 = vpop.permute.xlu1 %892 }
  0xb6   : > { %v898_v34 = vpop.permute.xlu0 %897 }
  0xb7   : > { %v903_v37 = vpop.permute.xlu1 %902 }
 0x135   : > { %v1578_v46 = vpop.f32.mrb[0].mxu0 }
 0x136   : > { %v730_v47 = vadd.f32 %v1578_v46, %v585_v45  ;;  %v724_v48 = vpop.f32.mrb[1].mxu0 }
 0x137   : > { %v725_v49 = vadd.f32 %v724_v48, %v580_v43 }
 0x138   : > { %v744_v50 = vmax.f32 %v730_v47, 0.0 }
 0x139   : > { %v743_v52 = vmax.f32 %v725_v49, 0.0  ;;  %v1581_v53 = vpop.f32.mrb[2].mxu0 }
 0x13a   : > { %v740_v54 = vadd.f32 %v1581_v53, %v595_v51  ;;  %v734_v55 = vpop.f32.mrb[3].mxu0 }
 0x13b   : > { %v735_v56 = vadd.f32 %v734_v55, %v590_v44  ;;  %v1686_v57 = vpack.c.bf16 %v744_v50, %v743_v52 }
 0x13c   : > { %v746_v58 = vmax.f32 %v740_v54, 0.0 }
 0x13d   : > { %v745_v59 = vmax.f32 %v735_v56, 0.0  ;;  %1687 = vmatprep.subr.bf16.mxu1 %v1686_v57 }
 0x13e   : > { %1689 = vmatpush3.bf16.msra.mxu1 %v1686_v57  ;;  %v1462_v57 = vld [vmem:[%s545_s27] ss:$0 sm:$0xff] }
 0x13f   : > { %v1690_v60 = vpack.c.bf16 %v746_v58, %v745_v59 }
 0x141   : > { %1691 = vmatprep.subr.bf16.mxu1 %v1690_v60 }
 0x142   : > { %1693 = vmatpush3.bf16.msra.mxu1 %v1690_v60 }
 0x145   : > { %1591 = vmatmul.mubr.msk.f32.vlgmr.msra.gmra.mrb[0].mxu1 %vm775_vm2, %v748_v61 }
 0x146   : > { %1593 = vmatprep.mubr.msk.f32.mxu1 %vm775_vm2, %v749_v62 }
 0x149   : > { %1594 = vmatmul.mubr.msk.f32.gmra.mrb[2].mxu1 %vm775_vm2, %v750_v63 }
 0x14a   : > { %1604 = vmatprep.mubr.msk.f32.mxu1 %vm775_vm2, %v877_v0 }
 0x218   : > { %v1592_v3 = vpop.f32.mrb[0].mxu1 }
 0x219   : > { %v860_v4 = vadd.f32 %v1592_v3, %v763_v1  ;;  %v854_v5 = vpop.f32.mrb[1].mxu1 }
 0x21a   : > { %v855_v6 = vadd.f32 %v854_v5, %v758_v2 }
 0x21b   : > { %v874_v7 = vmax.f32 %v860_v4, 0.0 }
 0x21c   : > { %v873_v9 = vmax.f32 %v855_v6, 0.0  ;;  %v1595_v10 = vpop.f32.mrb[2].mxu1 }
 0x21d   : > { %v870_v12 = vadd.f32 %v1595_v10, %v773_v8  ;;  %v864_v13 = vpop.f32.mrb[3].mxu1 }
 0x21e   : > { %v1694_v14 = vpack.c.bf16 %v874_v7, %v873_v9  ;;  %v865_v15 = vadd.f32 %v864_v13, %v768_v11 }
 0x21f   : > { %v876_v16 = vmax.f32 %v870_v12, 0.0 }
 0x220   : > { %v875_v17 = vmax.f32 %v865_v15, 0.0  ;;  %1695 = vmatprep.subr.bf16.mxu1 %v1694_v14 }
 0x221   : > { %1697 = vmatpush3.bf16.msra.mxu1 %v1694_v14 }
 0x222   : > { %v1698_v18 = vpack.c.bf16 %v876_v16, %v875_v17 }
 0x224   : > { %1699 = vmatprep.subr.bf16.mxu1 %v1698_v18 }
 0x225   : > { %1701 = vmatpush3.bf16.msra.mxu1 %v1698_v18 }
 0x226   : > { %1704 = vmatprep.subr.msk.bf16.mxu1 %vm1703_vm3, %v1702_v24 }
 0x228   : > { %1605 = vmatmul.mubr.msk.f32.vlgmr.msra.gmra.mrb[4].mxu1 %vm775_vm2, %v878_v19 }
 0x229   : > { %1607 = vmatprep.mubr.msk.f32.mxu1 %vm775_vm2, %v879_v20 }
 0x22c   : > { %1608 = vmatmul.mubr.msk.f32.gmra.mrb[6].mxu1 %vm775_vm2, %v880_v21 }
 0x22e   : > { %1707 = vmatpush3.bf16.xpose.msk.msra.mxu1 %vm1703_vm3, %v1702_v24 }
 0x2fb   : > { %v1606_v25 = vpop.f32.mrb[4].mxu1 }
 0x2fc   : > { %v983_v27 = vpop.f32.mrb[5].mxu1  ;;  %v989_v30 = vadd.f32 %v1606_v25, %v893_v29 }
 0x2fd   : > { %v984_v28 = vadd.f32 %v983_v27, %v888_v26 }
 0x2fe   : > { %v1003_v35 = vmax.f32 %v989_v30, 0.0 }
 0x2ff   : > { %v1002_v31 = vmax.f32 %v984_v28, 0.0  ;;  %v1609_v32 = vpop.f32.mrb[6].mxu1 }
 0x300   : > { %v993_v33 = vpop.f32.mrb[7].mxu1  ;;  %v999_v38 = vadd.f32 %v1609_v32, %v903_v37 }
 0x301   : > { %1015 = vxpose.xlu0.b32.start [1/4] (short) %v1002_v31, 128  ;;  %v994_v36 = vadd.f32 %v993_v33, %v898_v34 }
 0x302   : > { %v1005_v40 = vmax.f32 %v999_v38, 0.0 }
 0x303   : > { %v1004_v39 = vmax.f32 %v994_v36, 0.0 }
 0x305   : > { %1016 = vxpose.xlu0.b32.cont [2/4] (short) %v1003_v35, 128 }
 0x309   : > { %1017 = vxpose.xlu0.b32.cont [3/4] (short) %v1004_v39, 128 }
 0x30d   : > { %1018 = vxpose.xlu0.b32.end [4/4] (short) %v1005_v40, 128 }
 0x381   : > { %v1031_v41 = vpop.trf.xlu0 }
 0x382   : > { %1614 = vmatprep.mubr.msk.f32.mxu1 %vm775_vm2, %v1031_v41 }
 0x385   : > { %v1032_v42 = vpop.trf.xlu0 }
 0x386   : > { %1615 = vmatmul.mubr.msk.f32.vlgmr.msra.gmra.mrb[8].mxu1 %vm775_vm2, %v1032_v42 }
 0x389   : > { %v1033_v43 = vpop.trf.xlu0 }
 0x38a   : > { %1617 = vmatprep.mubr.msk.f32.mxu1 %vm775_vm2, %v1033_v43 }
 0x38d   : > { %v1034_v44 = vpop.trf.xlu0 }
 0x38e   : > { %1618 = vmatmul.mubr.msk.f32.gmra.mrb[10].mxu1 %vm775_vm2, %v1034_v44 }
 0x391   : > { %v1035_v45 = vpop.trf.xlu0 }
 0x392   : > { %1620 = vmatprep.mubr.msk.f32.mxu1 %vm775_vm2, %v1035_v45 }
 0x395   : > { %v1036_v46 = vpop.trf.xlu0 }
 0x396   : > { %1621 = vmatmul.mubr.msk.f32.gmra.mrb[12].mxu1 %vm775_vm2, %v1036_v46 }
 0x399   : > { %v1037_v47 = vpop.trf.xlu0 }
 0x39a   : > { %1623 = vmatprep.mubr.msk.f32.mxu1 %vm775_vm2, %v1037_v47 }
 0x39d   : > { %v1038_v48 = vpop.trf.xlu0 }
 0x39e   : > { %1624 = vmatmul.mubr.msk.f32.gmra.mrb[14].mxu1 %vm775_vm2, %v1038_v48 }
 0x3a1   : > { %v1039_v49 = vpop.trf.xlu0 }
 0x3a2   : > { %1626 = vmatprep.mubr.msk.f32.mxu1 %vm775_vm2, %v1039_v49 }
 0x3a5   : > { %v1040_v50 = vpop.trf.xlu0 }
 0x3a6   : > { %1627 = vmatmul.mubr.msk.f32.gmra.mrb[16].mxu1 %vm775_vm2, %v1040_v50 }
 0x3a9   : > { %v1041_v51 = vpop.trf.xlu0 }
 0x3aa   : > { %1629 = vmatprep.mubr.msk.f32.mxu1 %vm775_vm2, %v1041_v51 }
 0x3ad   : > { %v1042_v52 = vpop.trf.xlu0 }
 0x3ae   : > { %1630 = vmatmul.mubr.msk.f32.gmra.mrb[18].mxu1 %vm775_vm2, %v1042_v52 }
 0x3b1   : > { %v1043_v53 = vpop.trf.xlu0 }
 0x3b2   : > { %1632 = vmatprep.mubr.msk.f32.mxu1 %vm775_vm2, %v1043_v53 }
 0x3b5   : > { %v1044_v54 = vpop.trf.xlu0 }
 0x3b6   : > { %1633 = vmatmul.mubr.msk.f32.gmra.mrb[20].mxu1 %vm775_vm2, %v1044_v54 }
 0x3b9   : > { %v1045_v55 = vpop.trf.xlu0 }
 0x3ba   : > { %1635 = vmatprep.mubr.msk.f32.mxu1 %vm775_vm2, %v1045_v55 }
 0x3bd   : > { %v1046_v56 = vpop.trf.xlu0 }
 0x3be   : > { %1636 = vmatmul.mubr.msk.f32.gmra.mrb[22].mxu1 %vm775_vm2, %v1046_v56 }
 0x459   : > { %v1616_v58 = vpop.f32.mrb[8].mxu1 }
 0x45a   : > { %v1173_v59 = vadd.f32 %v1616_v58, %v1462_v57  ;;  %v1167_v60 = vpop.f32.mrb[9].mxu1 }
 0x45b   : > { %v1168_v61 = vadd.f32 %v1462_v57, %v1167_v60 }
 0x45c   : > { %1247 = vst.msk [vmem:[%s1961_s12 + $0x8] sm:$0xff] %vm597_vm0, %v1173_v59 }
 0x45d   : > { %1246 = vst.msk [vmem:[%s1961_s12] sm:$0xff] %vm597_vm0, %v1168_v61 }
 0x461   : > { %v1619_v62 = vpop.f32.mrb[10].mxu1 }
 0x462   : > { %v1183_v63 = vadd.f32 %v1619_v62, %v1462_v57  ;;  %v1177_v0 = vpop.f32.mrb[11].mxu1 }
 0x463   : > { %v1178_v1 = vadd.f32 %v1462_v57, %v1177_v0 }
 0x464   : > { %1249 = vst.msk [vmem:[%s1961_s12 + $0x18] sm:$0xff] %vm597_vm0, %v1183_v63 }
 0x465   : > { %1248 = vst.msk [vmem:[%s1961_s12 + $0x10] sm:$0xff] %vm597_vm0, %v1178_v1 }
 0x469   : > { %v1622_v2 = vpop.f32.mrb[12].mxu1 }
 0x46a   : > { %v1193_v3 = vadd.f32 %v1622_v2, %v1462_v57  ;;  %v1187_v4 = vpop.f32.mrb[13].mxu1 }
 0x46b   : > { %v1188_v5 = vadd.f32 %v1462_v57, %v1187_v4 }
 0x46c   : > { %1251 = vst.msk [vmem:[%s1961_s12 + $0x28] sm:$0xff] %vm597_vm0, %v1193_v3 }
 0x46d   : > { %1250 = vst.msk [vmem:[%s1961_s12 + $0x20] sm:$0xff] %vm597_vm0, %v1188_v5 }
 0x471   : > { %v1625_v6 = vpop.f32.mrb[14].mxu1 }
 0x472   : > { %v1203_v7 = vadd.f32 %v1625_v6, %v1462_v57  ;;  %v1197_v8 = vpop.f32.mrb[15].mxu1 }
 0x473   : > { %v1198_v9 = vadd.f32 %v1462_v57, %v1197_v8 }
 0x474   : > { %1253 = vst.msk [vmem:[%s1961_s12 + $0x38] sm:$0xff] %vm597_vm0, %v1203_v7 }
 0x475   : > { %1252 = vst.msk [vmem:[%s1961_s12 + $0x30] sm:$0xff] %vm597_vm0, %v1198_v9 }
 0x479   : > { %v1628_v10 = vpop.f32.mrb[16].mxu1 }
 0x47a   : > { %v1213_v11 = vadd.f32 %v1628_v10, %v1462_v57  ;;  %v1207_v12 = vpop.f32.mrb[17].mxu1 }
 0x47b   : > { %v1208_v13 = vadd.f32 %v1462_v57, %v1207_v12 }
 0x47c   : > { %1255 = vst.msk [vmem:[%s1961_s12 + $0x48] sm:$0xff] %vm597_vm0, %v1213_v11 }
 0x47d   : > { %1254 = vst.msk [vmem:[%s1961_s12 + $0x40] sm:$0xff] %vm597_vm0, %v1208_v13 }
 0x481   : > { %v1631_v14 = vpop.f32.mrb[18].mxu1 }
 0x482   : > { %v1223_v15 = vadd.f32 %v1631_v14, %v1462_v57  ;;  %v1217_v16 = vpop.f32.mrb[19].mxu1 }
 0x483   : > { %v1218_v17 = vadd.f32 %v1462_v57, %v1217_v16 }
 0x484   : > { %1257 = vst.msk [vmem:[%s1961_s12 + $0x58] sm:$0xff] %vm597_vm0, %v1223_v15 }
 0x485   : > { %1256 = vst.msk [vmem:[%s1961_s12 + $0x50] sm:$0xff] %vm597_vm0, %v1218_v17 }
 0x489   : > { %v1634_v18 = vpop.f32.mrb[20].mxu1 }
 0x48a   : > { %v1233_v19 = vadd.f32 %v1634_v18, %v1462_v57  ;;  %v1227_v20 = vpop.f32.mrb[21].mxu1 }
 0x48b   : > { %v1228_v21 = vadd.f32 %v1462_v57, %v1227_v20 }
 0x48c   : > { %1259 = vst.msk [vmem:[%s1961_s12 + $0x68] sm:$0xff] %vm597_vm0, %v1233_v19 }
 0x48d   : > { %1258 = vst.msk [vmem:[%s1961_s12 + $0x60] sm:$0xff] %vm597_vm0, %v1228_v21 }
 0x491   : > { %v1637_v22 = vpop.f32.mrb[22].mxu1 }
 0x492   : > { %v1243_v23 = vadd.f32 %v1637_v22, %v1462_v57  ;;  %v1237_v24 = vpop.f32.mrb[23].mxu1 }
 0x493   : > { %v1238_v25 = vadd.f32 %v1462_v57, %v1237_v24 }
 0x494   : > { %1261 = vst.msk [vmem:[%s1961_s12 + $0x78] sm:$0xff] %vm597_vm0, %v1243_v23 }
 0x495   : > { %1260 = vst.msk [vmem:[%s1961_s12 + $0x70] sm:$0xff] %vm597_vm0, %v1238_v25 }
 0x496 PF: > { %s26_s18 = sadd.s32 1, %s1741_s18  }
 0x497   : > { %p23_p3 = scmp.ge.s32.totalorder %s26_s18, 4  }
 0x499   :  { %25 = sbr.rel (!%p23_p3) target bundleno = 16 (0x10), region = 110 }

</bundles_post_ra>
